<compile_context>
chip_gen: v7x
topology: tpu7x:2x2x1
jax: 0.10.0
libtpu: 0.0.40
codegen_flags: <defaults>
</compile_context>

<pallas_src>
import jax
import jax.numpy as jnp
from jax.experimental import pallas as pl
from jax.experimental.pallas import tpu as pltpu


def _hier_attn_kernel(x_ref, w1_ref, b1_ref, w2_ref, out_ref):
    # x:(B,S,D)  w1:(D,H)  b1:(1,H)  w2:(1,H)  out:(B,D)
    x = x_ref[...]
    B, S, D = x.shape

    # --- Linear(D->H) + ReLU as one flat MXU matmul -------------------------
    x2 = x.reshape(B * S, D)                                        # leading-dim collapse (free)
    h = jnp.dot(x2, w1_ref[...], preferred_element_type=jnp.float32)  # (B*S, H)
    h = jnp.maximum(h + b1_ref[...], 0.0)                           # (B*S, H)
    h = h.reshape(B, S, -1)                                         # (B, S, H)

    # --- Linear(H->1): lane-dense VPU multiply + lane (XLU) reduction -------
    # w2 is stored as a (1, H) row; b2 is omitted (uniform shift before softmax
    # does not change the softmax output).
    s = jnp.sum(h * w2_ref[...][None, :, :], axis=-1)               # (B, S), S on lanes

    # --- softmax over the sequence axis (lane-dense) ------------------------
    m = jnp.max(s, axis=-1, keepdims=True)                          # (B, 1)
    e = jnp.exp(s - m)                                              # (B, S)
    denom = jnp.sum(e, axis=-1, keepdims=True)                      # (B, 1)
    inv = pl.reciprocal(denom, approx=True)                         # EUP slot
    inv = inv * (2.0 - denom * inv)                                 # one Newton step -> ~f32 accuracy
    w = e * inv                                                     # (B, S)

    # --- weighted sum over the sequence --------------------------------------
    out = jnp.sum(x.astype(jnp.float32) * w[:, :, None], axis=1)    # (B, D)
    out_ref[...] = out.astype(out_ref.dtype)


def hierarchical_attention(x, w1, b1, w2, b2=None):
    """Pallas wrapper.

    x : (B, S, D) or (B, D)  (a 2-D input is expanded to (B, 1, D), as in the module)
    w1: (D, H)  b1: (H,)     -- first Linear, stored (in, out) (== torch W1.T)
    w2: (H, 1)  b2: (1,)     -- second Linear; b2 is accepted but unused (softmax-invariant)
    Returns (B, D).
    """
    del b2  # uniform shift along the softmax axis: no effect on the output
    if x.ndim == 2:
        x = x[:, None, :]
    B, S, D = x.shape
    H = w1.shape[1]

    b1_row = b1.reshape(1, H)
    w2_row = w2.reshape(H, 1).T.reshape(1, H)   # lane-dense (1, H) row

    vmem = pltpu.MemorySpace.VMEM
    return pl.pallas_call(
        _hier_attn_kernel,
        out_shape=jax.ShapeDtypeStruct((B, D), x.dtype),
        in_specs=[
            pl.BlockSpec(memory_space=vmem),    # x
            pl.BlockSpec(memory_space=vmem),    # w1
            pl.BlockSpec(memory_space=vmem),    # b1 (1,H)
            pl.BlockSpec(memory_space=vmem),    # w2 (1,H)
        ],
        out_specs=pl.BlockSpec(memory_space=vmem),
    )(x, w1, b1_row, w2_row)


def _reference(x, w1, b1, w2, b2):
    """Pure-JAX reference of the PyTorch forward (including b2)."""
    if x.ndim == 2:
        x = x[:, None, :]
    h = jnp.maximum(jnp.einsum("bsd,dh->bsh", x, w1) + b1, 0.0)
    s = jnp.einsum("bsh,ho->bso", h, w2) + b2
    w = jax.nn.softmax(s, axis=1)
    return jnp.sum(x * w, axis=1)


if __name__ == "__main__":
    # Module config: input_dim=32, hidden_dim=256 (the nn.Module default).
    B, S, D, H = 2, 8, 32, 256

    key = jax.random.PRNGKey(0)
    kx, k1, k2, k3, k4 = jax.random.split(key, 5)

    x = jax.random.normal(kx, (B, S, D), dtype=jnp.float32)

    # Deterministic param init (uniform +-1/sqrt(fan_in), like torch's default Linear init).
    lim1 = 1.0 / jnp.sqrt(jnp.float32(D))
    lim2 = 1.0 / jnp.sqrt(jnp.float32(H))
    w1 = jax.random.uniform(k1, (D, H), jnp.float32, -lim1, lim1)   # Linear(D -> H), stored (in, out)
    b1 = jax.random.uniform(k2, (H,), jnp.float32, -lim1, lim1)
    w2 = jax.random.uniform(k3, (H, 1), jnp.float32, -lim2, lim2)   # Linear(H -> 1), stored (in, out)
    b2 = jax.random.uniform(k4, (1,), jnp.float32, -lim2, lim2)

    out = hierarchical_attention(x, w1, b1, w2, b2)
    out = jax.block_until_ready(out)

    ref = _reference(x, w1, b1, w2, b2)
    assert out.shape == (B, D)
    # 1e-4 tolerance: approx EUP reciprocal + one Newton step is ~f32-accurate.
    assert jnp.allclose(out, ref, atol=1e-4, rtol=1e-4), "mismatch vs JAX reference"

    print("KERNEL_OK")
</pallas_src>

<mosaic_0001>
module attributes {stable_mosaic.version = 11 : i64} {
  func.func @_hier_attn_kernel(%arg0: memref<2x8x32xf32, #tpu.memory_space<vmem>>, %arg1: memref<32x256xf32, #tpu.memory_space<vmem>>, %arg2: memref<1x256xf32, #tpu.memory_space<vmem>>, %arg3: memref<1x256xf32, #tpu.memory_space<vmem>>, %arg4: memref<2x32xf32, #tpu.memory_space<vmem>>) attributes {dimension_semantics = [], scalar_prefetch = 0 : i64, scratch_operands = 0 : i64, tpu.core_type = #tpu.core_type<tc>} {
    %c0 = arith.constant 0 : index
    %c0_0 = arith.constant 0 : index
    %c0_1 = arith.constant 0 : index
    %0 = vector.load %arg0[%c0, %c0_0, %c0_1] : memref<2x8x32xf32, #tpu.memory_space<vmem>>, vector<2x8x32xf32>
    %1 = vector.shape_cast %0 : vector<2x8x32xf32> to vector<16x32xf32>
    %c0_2 = arith.constant 0 : index
    %c0_3 = arith.constant 0 : index
    %2 = vector.load %arg1[%c0_2, %c0_3] : memref<32x256xf32, #tpu.memory_space<vmem>>, vector<32x256xf32>
    %cst = arith.constant dense<0.000000e+00> : vector<16x256xf32>
    %3 = tpu.matmul %1, %2, %cst {dimension_numbers = #tpu.dot_dimension_numbers<[1], [0], [0], [1], [0, 0, 1, 1], [], []>} : vector<16x32xf32>, vector<32x256xf32>, vector<16x256xf32> -> vector<16x256xf32>
    %c0_4 = arith.constant 0 : index
    %c0_5 = arith.constant 0 : index
    %4 = vector.load %arg2[%c0_4, %c0_5] : memref<1x256xf32, #tpu.memory_space<vmem>>, vector<1x256xf32>
    %5 = vector.broadcast %4 : vector<1x256xf32> to vector<16x256xf32>
    %6 = arith.addf %3, %5 : vector<16x256xf32>
    %cst_6 = arith.constant 0.000000e+00 : f32
    %7 = vector.broadcast %cst_6 : f32 to vector<16x256xf32>
    %8 = arith.maximumf %6, %7 : vector<16x256xf32>
    %9 = vector.shape_cast %8 : vector<16x256xf32> to vector<2x8x256xf32>
    %c0_7 = arith.constant 0 : index
    %c0_8 = arith.constant 0 : index
    %10 = vector.load %arg3[%c0_7, %c0_8] : memref<1x256xf32, #tpu.memory_space<vmem>>, vector<1x256xf32>
    %11 = vector.shape_cast %10 : vector<1x256xf32> to vector<1x1x256xf32>
    %12 = vector.broadcast %11 : vector<1x1x256xf32> to vector<2x8x256xf32>
    %13 = arith.mulf %9, %12 : vector<2x8x256xf32>
    %cst_9 = arith.constant dense<0.000000e+00> : vector<2x8xf32>
    %14 = vector.multi_reduction <add>, %13, %cst_9 [2] : vector<2x8x256xf32> to vector<2x8xf32>
    %cst_10 = arith.constant dense<0xFF800000> : vector<2xf32>
    %15 = vector.multi_reduction <maximumf>, %14, %cst_10 [1] : vector<2x8xf32> to vector<2xf32>
    %16 = vector.shape_cast %15 : vector<2xf32> to vector<2x1xf32>
    %17 = vector.broadcast %16 : vector<2x1xf32> to vector<2x8xf32>
    %18 = arith.subf %14, %17 : vector<2x8xf32>
    %19 = math.exp %18 : vector<2x8xf32>
    %cst_11 = arith.constant dense<0.000000e+00> : vector<2xf32>
    %20 = vector.multi_reduction <add>, %19, %cst_11 [1] : vector<2x8xf32> to vector<2xf32>
    %21 = vector.shape_cast %20 : vector<2xf32> to vector<2x1xf32>
    %22 = tpu.reciprocal %21 {approx = true} : vector<2x1xf32> -> vector<2x1xf32>
    %23 = arith.mulf %21, %22 : vector<2x1xf32>
    %cst_12 = arith.constant 2.000000e+00 : f32
    %24 = vector.broadcast %cst_12 : f32 to vector<2x1xf32>
    %25 = arith.subf %24, %23 : vector<2x1xf32>
    %26 = arith.mulf %22, %25 : vector<2x1xf32>
    %27 = vector.broadcast %26 : vector<2x1xf32> to vector<2x8xf32>
    %28 = arith.mulf %19, %27 : vector<2x8xf32>
    %29 = vector.shape_cast %28 : vector<2x8xf32> to vector<2x8x1xf32>
    %30 = vector.broadcast %29 : vector<2x8x1xf32> to vector<2x8x32xf32>
    %31 = arith.mulf %0, %30 : vector<2x8x32xf32>
    %cst_13 = arith.constant dense<0.000000e+00> : vector<2x32xf32>
    %32 = vector.multi_reduction <add>, %31, %cst_13 [1] : vector<2x8x32xf32> to vector<2x32xf32>
    %c0_14 = arith.constant 0 : index
    %c0_15 = arith.constant 0 : index
    %33 = vector.load %arg4[%c0_14, %c0_15] : memref<2x32xf32, #tpu.memory_space<vmem>>, vector<2x32xf32>
    tpu.vector_store %arg4[%c0_14, %c0_15], %32 {strides = array<i32>} : memref<2x32xf32, #tpu.memory_space<vmem>>, vector<2x32xf32>,
    return
  }
}

</mosaic_0001>

<bundles_post_ra>
// kernel: tpu_custom_call.1
= control target key start
LH: loop header
LB: loop body
LE: loop exit
PB: predicated region body
PF: predicated region fallthrough
CT: control target
= control target key end

     0   :  { %9 = vsyncpa [#allocation3], 0  ;;  %s508_s0 = inlined_call_operand.hbm [shape: f32[2,8,32], index: 0, kind: input, shape index: {}]   ;;  %s509_s1 = inlined_call_operand.hbm [shape: f32[32,256], index: 1, kind: input, shape index: {}]   ;;  %s510_s2 = inlined_call_operand.vmem [shape: f32[1,256], index: 2, kind: input, shape index: {}]   ;;  %s511_s3 = inlined_call_operand.vmem [shape: f32[1,256], index: 3, kind: input, shape index: {}]   ;;  %s512_s4 = inlined_call_operand.hbm [shape: f32[2,32], index: 4, kind: output, shape index: {}]  }
   0x1   :  { %10 = vsyncpa [#allocation6], 0 }
   0x2   :  { %11 = vsyncpa [#allocation4], 0  ;;  %s403_s15 = smov [#allocation2]   ;;  %s331_s19 = scalar_lea.hbm %s508_s0, 256 }
   0x3   :  { %s17_s16 = sshll.u32 %s403_s15, 4  ;;  %p332_p0 = scmp.ne.s32.totalorder %s508_s0, %s331_s19  ;;  %s18_s16 = int_to_ptr.vmem [resolvable:$true] %s17_s16 }
   0x4   :  { %p335_p1 = scmp.lt.u32.totalorder %s331_s19, %s508_s0 }
   0x6   :  { %p337_p2 = pnand %p335_p1, %p332_p0 }
   0x8   :  { %340 = shalt.err (!%p337_p2)
}
   0x9   :  { %s341_s24 = scalar_lea.vmem %s18_s16, 256  ;;  %p346_p4 = scmp.lt.s32.totalorder %s18_s16, %s18_s16 }
   0xa   :  { %p342_p3 = scmp.ne.s32.totalorder %s18_s16, %s341_s24  ;;  %p347_p5 = scmp.lt.s32.totalorder %s341_s24, %s341_s24 }
   0xc   :  { %p348_p6 = por %p347_p5, %p346_p4 }
   0xe   :  { %p349_p7 = pnand %p348_p6, %p342_p3 }
  0x10   :  { %352 = shalt.err (!%p349_p7)
}
  0x11   :  { %s404_s25 = smov 128   ;;  %s405_s26 = smov 8  }
  0x12   :  { %23 = dma.hbm_to_vmem [thread:$0]  %s508_s0, 256, %s18_s16, [#allocation3], %s404_s25, %s404_s25, %s405_s26  }
  0x13   :  { %s406_s29 = smov [#allocation5]   ;;  %s353_s7 = scalar_lea.hbm %s509_s1, 1024 }
  0x14   :  { %s29_s30 = sshll.u32 %s406_s29, 4  ;;  %p354_p8 = scmp.ne.s32.totalorder %s509_s1, %s353_s7  ;;  %s30_s30 = int_to_ptr.vmem [resolvable:$true] %s29_s30 }
  0x15   :  { %p357_p9 = scmp.lt.u32.totalorder %s353_s7, %s509_s1 }
  0x17   :  { %p359_p10 = pnand %p357_p9, %p354_p8 }
  0x19   :  { %362 = shalt.err (!%p359_p10)
}
  0x1a   :  { %s363_s12 = scalar_lea.vmem %s30_s30, 1024  ;;  %p368_p12 = scmp.lt.s32.totalorder %s30_s30, %s30_s30 }
  0x1b   :  { %p364_p11 = scmp.ne.s32.totalorder %s30_s30, %s363_s12  ;;  %p369_p13 = scmp.lt.s32.totalorder %s363_s12, %s363_s12 }
  0x1d   :  { %p370_p0 = por %p369_p13, %p368_p12 }
  0x1f   :  { %p371_p1 = pnand %p370_p0, %p364_p11 }
  0x21   :  { %374 = shalt.err (!%p371_p1)
}
  0x22   :  { %s407_s0 = smov 256   ;;  %s408_s13 = smov 16  }
  0x23   :  { %35 = dma.hbm_to_vmem [thread:$0]  %s509_s1, 1024, %s30_s30, [#allocation6], %s407_s0, %s407_s0, %s408_s13  }
  0x24   :  { %397 = dma.done.wait [#allocation3], 256  }
  0x25   :  { %398 = vsyncadd [#allocation3], 4294967040 }
  0x26   :  { %399 = dma.done.wait [#allocation6], 1024  }
  0x27   :  { %400 = vsyncadd [#allocation6], 4294966272  ;;  %v409_v0 = vmov 0.0   ;;  %v49_v1 = vld [vmem:[#allocation5 + $0x8] sm:$0xff]  ;;  %v51_v2 = vld [vmem:[#allocation5 + $0x18] sm:$0xff]  ;;  %vm68_vm0 = vcmask 261120   ;;  %v58_v15 = vlaneseq }
  0x28   :  { %139 = vmatprep.mubr.f32.mxu0 %v409_v0  ;;  %145 = vmatprep.mubr.f32.mxu1 %v409_v0  ;;  %v48_v3 = vld [vmem:[#allocation5] sm:$0xff]  ;;  %v302_v4 = vpack.c.bf16 %v51_v2, %v49_v1  ;;  %v50_v5 = vld [vmem:[#allocation5 + $0x10] sm:$0xff]  ;;  %v53_v6 = vld [vmem:[#allocation5 + $0x28] sm:$0xff]  ;;  %vm190_vm1 = vcmask 1041409   ;;  %vm193_vm2 = vcmask 58368   ;;  %v410_v51 = vmov 0  }
  0x29   :  { %v55_v7 = vld [vmem:[#allocation5 + $0x38] sm:$0xff]  ;;  %v304_v8 = vpack.c.bf16 %v50_v5, %v48_v3  ;;  %v52_v10 = vld [vmem:[#allocation5 + $0x20] sm:$0xff]  ;;  %v54_v11 = vld [vmem:[#allocation5 + $0x30] sm:$0xff]  ;;  %v59_v16 = vshrl.u32 %v58_v15, 7  ;;  %v181_v43 = vand.u32 127, %v58_v15  ;;  %324 = vset.pattern.permute.xlu0 %v410_v51  ;;  %323 = vset.pattern.permute.xlu1 %v410_v51  ;;  %vm282_vm3 = vcmask 254976  }
  0x2a   :  { %v306_v9 = vpack.c.bf16 %v55_v7, %v53_v6  ;;  %303 = vmatprep.subr.bf16.mxu0 %v302_v4  ;;  %310 = vmatprep.subr.bf16.mxu1 %v302_v4  ;;  %v308_v12 = vpack.c.bf16 %v54_v11, %v52_v10  ;;  %v461_v13 = vld [vmem:[#allocation2] sm:$0xff]  ;;  %v463_v14 = vld [vmem:[#allocation2 + $0x8] sm:$0xff] }
  0x2b   :  { %305 = vmatpush1.bf16.msra.mxu0 %v304_v8  ;;  %312 = vmatpush1.bf16.msra.mxu1 %v304_v8  ;;  %v469_v17 = vsub.s32 0, %v59_v16  ;;  %v56_v18 = vld [vmem:[%s510_s2] sm:$0x3]  ;;  %v474_v19 = vsub.s32 1, %v59_v16  ;;  %v184_v45 = vsub.s32 %v181_v43, %v59_v16  ;;  %s411_s2 = smov [#allocation7]  }
  0x2c   :  { %307 = vmatprep.subr.bf16.mxu0 %v306_v9  ;;  %311 = vmatprep.subr.bf16.mxu1 %v306_v9  ;;  %v156_v22 = vld [vmem:[%s511_s3] sm:$0x3]  ;;  %s290_s3 = sshll.u32 %s411_s2, 4  ;;  %s291_s3 = int_to_ptr.vmem [resolvable:$true] %s290_s3 }
  0x2d   :  { %v61_v20 = vrot.slane %v56_v18, %v469_v17  ;;  %v65_v21 = vrot.slane %v56_v18, %v474_v19  ;;  %v161_v28 = vrot.slane %v156_v22, %v469_v17  ;;  %v165_v32 = vrot.slane %v156_v22, %v474_v19  ;;  %s375_s19 = scalar_lea.vmem %s291_s3, 32  ;;  %p380_p3 = scmp.lt.s32.totalorder %s291_s3, %s291_s3 }
  0x2e   :  { %p376_p2 = scmp.ne.s32.totalorder %s291_s3, %s375_s19  ;;  %p381_p4 = scmp.lt.s32.totalorder %s375_s19, %s375_s19 }
  0x2f   :  { %309 = vmatpush1.bf16.msra.mxu0 %v308_v12  ;;  %313 = vmatpush1.bf16.msra.mxu1 %v308_v12 }
  0x30   :  { %p382_p5 = por %p381_p4, %p380_p3 }
  0x32   :  { %300 = vmatmul.mubr.msk.f32.vlgmr.msra.gmra.mrb[0].mxu0 %vm68_vm0, %v461_v13  ;;  %301 = vmatmul.mubr.msk.f32.vlgmr.msra.gmra.mrb[0].mxu1 %vm68_vm0, %v463_v14  ;;  %p383_p6 = pnand %p382_p5, %p376_p2 }
 0x105   :  { %v141_v23 = vpop.f32.mrb[0].mxu0  ;;  %v147_v24 = vpop.f32.mrb[0].mxu1 }
 0x106   :  { %v142_v25 = vadd.f32 %v141_v23, %v61_v20  ;;  %v143_v26 = vpop.f32.mrb[1].mxu0  ;;  %v148_v27 = vadd.f32 %v147_v24, %v61_v20  ;;  %v149_v29 = vpop.f32.mrb[1].mxu1 }
 0x107   :  { %v144_v30 = vadd.f32 %v143_v26, %v65_v21  ;;  %v150_v31 = vadd.f32 %v149_v29, %v65_v21 }
 0x108   :  { %v152_v33 = vmax.f32 %v142_v25, 0.0  ;;  %v154_v34 = vmax.f32 %v148_v27, 0.0 }
 0x109   :  { %v153_v35 = vmax.f32 %v144_v30, 0.0  ;;  %v155_v36 = vmax.f32 %v150_v31, 0.0 }
 0x10a   :  { %v170_v37 = vmul.f32 %v161_v28, %v154_v34  ;;  %v168_v38 = vmul.f32 %v161_v28, %v152_v33 }
 0x10b   :  { %v171_v39 = vmul.f32 %v165_v32, %v155_v36  ;;  %v169_v40 = vmul.f32 %v165_v32, %v153_v35 }
 0x10d   :  { %v172_v41 = vadd.f32 %v169_v40, %v168_v38  ;;  %v175_v42 = vadd.f32 %v171_v39, %v170_v37 }
 0x10f   :  { %173 = vadd.xlane.f32.xlu0 %v172_v41 }
 0x113   :  { %176 = vadd.xlane.f32.xlu0 %v175_v42 }
 0x19c   :  { %v174_v44 = vpop.xlane.xlu0 %173 }
 0x19d   :  { %v185_v47 = vrot.slane %v174_v44, %v184_v45 }
 0x1a0   :  { %v177_v46 = vpop.xlane.xlu0 %176 }
 0x1a1   :  { %v189_v48 = vrot.slane %v177_v46, %v184_v45 }
 0x1a3   :  { %v191_v49 = vsel %vm190_vm1, %v189_v48, %v185_v47 }
 0x1a4   :  { %v194_v50 = vsel %vm193_vm2, %v191_v49, -inf }
 0x1a5   :  { %195 = vmax.xlane.f32.xlu1 %v194_v50 }
 0x232   :  { %v196_v52 = vpop.xlane.xlu1 %195 }
 0x233   :  { %v201_v53 = vrot.slane %v196_v52, %v469_v17  ;;  %v205_v54 = vrot.slane %v196_v52, %v474_v19 }
 0x235   :  { %v208_v55 = vsub.f32 %v174_v44, %v201_v53  ;;  %v209_v56 = vsub.f32 %v177_v46, %v205_v54 }
 0x237   :  { %v210_v57 = vmul.f32 1.442695, %v208_v55  ;;  %v212_v58 = vmul.f32 1.442695, %v209_v56 }
 0x239   :  { %325 = vpow2.f32 %v210_v57 }
 0x23a   :  { %327 = vpow2.f32 %v212_v58 }
 0x243   :  { %v326_v59 = vpop.eup %325 }
 0x244   :  { %v328_v60 = vpop.eup %327  ;;  %217 = vperm.xlu1 %323, %v326_v59  }
 0x245   :  { %220 = vperm.xlu0 %324, %v328_v60  }
 0x2c3   :  { %v218_v61 = vpop.permute.xlu1 %217 }
 0x2c4   :  { %v221_v62 = vpop.permute.xlu0 %220  ;;  %v225_v63 = vrot.slane %v218_v61, %v184_v45 }
 0x2c5   :  { %v229_v0 = vrot.slane %v221_v62, %v184_v45 }
 0x2c7   :  { %v230_v1 = vsel %vm190_vm1, %v229_v0, %v225_v63 }
 0x2c8   :  { %v232_v2 = vsel %vm193_vm2, %v230_v1, 0.0 }
 0x2c9   :  { %233 = vadd.xlane.f32.xlu1 %v232_v2 }
 0x356   :  { %v234_v3 = vpop.xlane.xlu1 %233 }
 0x357   :  { %329 = vrcp.f32 %v234_v3 }
 0x361   :  { %v330_v4 = vpop.eup %329 }
 0x362   :  { %v236_v5 = vmul.f32 %v330_v4, %v234_v3 }
 0x364   :  { %v237_v6 = vsub.f32 2.0, %v236_v5 }
 0x366   :  { %v238_v7 = vmul.f32 %v330_v4, %v237_v6 }
 0x368   :  { %v243_v8 = vrot.slane %v238_v7, %v469_v17  ;;  %v247_v9 = vrot.slane %v238_v7, %v474_v19 }
 0x36a   :  { %v250_v10 = vmul.f32 %v326_v59, %v243_v8  ;;  %v251_v11 = vmul.f32 %v328_v60, %v247_v9 }
 0x36c   :  { %254 = vperm.xlu0 %324, %v250_v10  }
 0x370   :  { %259 = vperm.xlu0 %324, %v251_v11  }
 0x3eb   :  { %v255_v12 = vpop.permute.xlu0 %254 }
 0x3ec   :  { %v262_v15 = vmul.f32 %v255_v12, %v461_v13 }
 0x3ee   :  { %v264_v16 = vsel %vm68_vm0, %v262_v15, 0.0 }
 0x3ef   :  { %v265_v18 = vrot.slane %v264_v16, 4  ;;  %v260_v20 = vpop.permute.xlu0 %259 }
 0x3f0   :  { %v263_v21 = vmul.f32 %v260_v20, %v463_v14 }
 0x3f1   :  { %v266_v22 = vadd.f32 %v265_v18, %v264_v16 }
 0x3f2   :  { %v271_v23 = vsel %vm68_vm0, %v263_v21, 0.0 }
 0x3f3   :  { %v267_v24 = vrot.slane %v266_v22, 2  ;;  %v272_v17 = vrot.slane %v271_v23, 4 }
 0x3f5   :  { %v268_v25 = vadd.f32 %v267_v24, %v266_v22  ;;  %v273_v19 = vadd.f32 %v272_v17, %v271_v23 }
 0x3f7   :  { %v274_v26 = vrot.slane %v273_v19, 2  ;;  %v269_v27 = vrot.slane %v268_v25, 1 }
 0x3f9   :  { %v275_v28 = vadd.f32 %v274_v26, %v273_v19  ;;  %v270_v13 = vadd.f32 %v269_v27, %v268_v25 }
 0x3fb   :  { %v276_v29 = vrot.slane %v275_v28, 1 }
 0x3fd   :  { %v277_v30 = vadd.f32 %v276_v29, %v275_v28 }
 0x3ff   :  { %v280_v31 = vsel %vm190_vm1, %v277_v30, %v270_v13 }
 0x400   :  { %283 = vst.msk [vmem:[#allocation7] sm:$0x3] %vm282_vm3, %v280_v31 }
 0x401   :  { %386 = shalt.err (!%p383_p6)
}
 0x402   :  { %s387_s22 = scalar_lea.hbm %s512_s4, 32 }
 0x403   :  { %p388_p7 = scmp.ne.s32.totalorder %s512_s4, %s387_s22  ;;  %p391_p8 = scmp.lt.u32.totalorder %s387_s22, %s512_s4 }
 0x405   :  { %p393_p9 = pnand %p391_p8, %p388_p7 }
 0x407   :  { %396 = shalt.err (!%p393_p9)
}
 0x408   :  { %293 = dma.vmem_to_hbm [thread:$0]  %s291_s3, 32, %s512_s4, [#allocation4]  }
 0x409   :  { %401 = dma.done.wait [#allocation4], 32  }
 0x40a   :  { %402 = vsyncadd [#allocation4], 4294967264 }
 0x40b   :  { %297 = vsyncpa [#allocation3], 1 }
 0x40c   :  { %298 = vsyncpa [#allocation6], 1 }
 0x40d   :  { %299 = vsyncpa [#allocation4], 1 }

</bundles_post_ra>
